<compile_context>
chip_gen: v7x
topology: tpu7x:2x2x1
jax: 0.10.0
libtpu: 0.0.40
codegen_flags: <defaults>
</compile_context>

<pallas_src>
import functools

import jax
import jax.numpy as jnp
from jax import lax
from jax.experimental import pallas as pl
from jax.experimental.pallas import tpu as pltpu


def _round_up(x, m):
    return (x + m - 1) // m * m


def _nonlinear_kernel(*refs, activation, use_bias, acc_in_out, precision):
    idx = 0
    x_ref = refs[idx]; idx += 1
    w_ref = refs[idx]; idx += 1
    b_ref = None
    if use_bias:
        b_ref = refs[idx]; idx += 1
    o_ref = refs[idx]; idx += 1
    acc_ref = o_ref if acc_in_out else refs[idx]

    k = pl.program_id(2)

    # x_ref: (TM, TK), w_ref: (TN, TK)  (PyTorch nn.Linear weight layout).
    # Contract on K (dim 1 of both) -> (TM, TN); MXU-friendly A @ B.T form.
    partial = lax.dot_general(
        x_ref[...],
        w_ref[...],
        dimension_numbers=(((1,), (1,)), ((), ())),
        preferred_element_type=jnp.float32,
        precision=precision,
    )

    @pl.when(k == 0)
    def _():
        acc_ref[...] = partial.astype(acc_ref.dtype)

    @pl.when(k > 0)
    def _():
        acc_ref[...] += partial.astype(acc_ref.dtype)

    # Epilogue only on the final K step: bias, activation, cast, single store.
    @pl.when(k == pl.num_programs(2) - 1)
    def _():
        h = acc_ref[...].astype(jnp.float32)
        if use_bias:
            h = h + b_ref[...].astype(jnp.float32)
        if activation == "relu":
            h = jnp.maximum(h, 0.0)
        elif activation == "tanh":
            h = jnp.tanh(h)
        o_ref[...] = h.astype(o_ref.dtype)


def nonlinear_forward(x, weight, bias=None, activation=None, *,
                      operand_dtype=None, allow_weight_resident=True,
                      tm=512, tn=1024, tk=512):
    """Pallas equivalent of NonLinear.forward.

    Args:
      x:      (..., IN)
      weight: (OUT, IN)  (PyTorch nn.Linear layout — NOT transposed)
      bias:   (OUT,) or None
      activation: None | "relu" | "tanh"
      operand_dtype: None (use x.dtype, full precision) or jnp.bfloat16 for
        the half-traffic / MXU-native-rate fast path (accumulation stays f32).
    Returns:
      (..., OUT) in x.dtype
    """
    if activation not in (None, "relu", "tanh"):
        raise ValueError(f"unsupported activation: {activation}")

    lead_shape = x.shape[:-1]
    IN = x.shape[-1]
    OUT, IN2 = weight.shape
    assert IN == IN2, (IN, IN2)
    use_bias = bias is not None

    out_dtype = x.dtype
    op_dtype = jnp.dtype(operand_dtype) if operand_dtype is not None else jnp.dtype(x.dtype)
    op_bytes = op_dtype.itemsize
    out_bytes = jnp.dtype(out_dtype).itemsize
    # f32 outputs: accumulate directly into o_ref (resident across k), no scratch.
    acc_in_out = jnp.dtype(out_dtype) == jnp.float32
    # Full-precision MXU passes only for f32 operands (PyTorch parity).
    precision = lax.Precision.HIGHEST if op_dtype == jnp.float32 else None

    x2 = x.reshape(-1, IN).astype(op_dtype)
    w = weight.astype(op_dtype)
    B = x2.shape[0]

    # ---- generation-aware VMEM budget --------------------------------------
    try:
        phys_vmem = int(pltpu.get_tpu_info().vmem_capacity_bytes)
    except Exception:
        phys_vmem = 64 << 20  # conservative (v7x)
    budget = min(int(phys_vmem * 3 // 4), 96 << 20)

    def est_vmem(TM, TN, TK):
        tiles = TM * TK * op_bytes + TN * TK * op_bytes + TM * TN * out_bytes
        if use_bias:
            tiles += TN * 4
        est = 2 * tiles                      # double-buffered in/out
        if not acc_in_out:
            est += TM * TN * 4               # f32 accumulator scratch
        return est

    # ---- tile selection ------------------------------------------------------
    TM = TN = TK = None
    if allow_weight_resident:
        # Weight-resident fast path: whole (OUT, IN) weight as one block; its
        # (j, k) index map is constant so Pallas DMAs it exactly once.
        for tm_cand in (tm, tm // 2, tm // 4):
            tm_res = min(_round_up(B, 8), max(tm_cand, 8))
            if est_vmem(tm_res, OUT, IN) <= budget:
                TM, TN, TK = tm_res, OUT, IN
                break

    if TM is None:
        # General tiled path (full-extent blocks for dims below the target).
        TM = B if B <= tm else tm
        TN = OUT if OUT <= tn else tn
        TK = IN if IN <= tk else tk
        while est_vmem(TM, TN, TK) > budget and TN > 256:
            TN = _round_up(TN // 2, 128)
        while est_vmem(TM, TN, TK) > budget and TM > 256:
            TM = _round_up(TM // 2, 8)
        while est_vmem(TM, TN, TK) > budget and TK > 256:
            TK = _round_up(TK // 2, 128)

    Bp = _round_up(B, TM)
    OUTp = _round_up(OUT, TN)
    INp = _round_up(IN, TK)

    # v7x has two TensorCores: make sure the "parallel" axes expose >= 2 blocks
    # when the whole problem would otherwise land on one core (harmless on
    # single-TC v5e/v6e: only a tiny extra grid-step overhead).
    if Bp // TM == 1 and OUTp // TN == 1:
        if TN == OUT and OUT % 256 == 0:
            TN = OUT // 2
        elif TM == Bp and Bp % 16 == 0 and B >= 16:
            TM = Bp // 2
        OUTp = _round_up(OUT, TN)
        Bp = _round_up(B, TM)

    # Zero-padding: required semantically along K; along M/N only when tiled
    # dims do not divide (padded rows/cols are sliced off the output).
    if Bp != B or INp != IN:
        x2 = jnp.pad(x2, ((0, Bp - B), (0, INp - IN)))
    wp = w
    if OUTp != OUT or INp != IN:
        wp = jnp.pad(w, ((0, OUTp - OUT), (0, INp - IN)))

    operands = [x2, wp]
    in_specs = [
        pl.BlockSpec((TM, TK), lambda i, j, k: (i, k)),
        pl.BlockSpec((TN, TK), lambda i, j, k: (j, k)),
    ]
    if use_bias:
        b2 = bias.reshape(1, OUT).astype(jnp.float32)
        if OUTp != OUT:
            b2 = jnp.pad(b2, ((0, 0), (0, OUTp - OUT)))
        operands.append(b2)
        in_specs.append(pl.BlockSpec((1, TN), lambda i, j, k: (0, j)))

    grid = (Bp // TM, OUTp // TN, INp // TK)
    grid_m, grid_n, grid_k = grid

    scratch_shapes = [] if acc_in_out else [pltpu.VMEM((TM, TN), jnp.float32)]

    vmem_limit = int(min(max(est_vmem(TM, TN, TK) + (4 << 20), 32 << 20), budget))

    # Realistic streamed traffic: W re-streamed once per M tile (unless fully
    # resident), x re-streamed once per N tile when K is tiled.
    w_passes = 1 if (grid_n == 1 and grid_k == 1) else grid_m
    x_passes = 1 if grid_k == 1 else grid_n
    cost = pl.CostEstimate(
        flops=2 * B * IN * OUT,
        transcendentals=(B * OUT if activation == "tanh" else 0),
        bytes_accessed=int(x_passes * Bp * INp * op_bytes
                           + w_passes * OUTp * INp * op_bytes
                           + Bp * OUTp * out_bytes
                           + (OUTp * 4 if use_bias else 0)),
    )

    kernel = functools.partial(
        _nonlinear_kernel,
        activation=activation,
        use_bias=use_bias,
        acc_in_out=acc_in_out,
        precision=precision,
    )

    out_padded = pl.pallas_call(
        kernel,
        out_shape=jax.ShapeDtypeStruct((Bp, OUTp), out_dtype),
        grid_spec=pltpu.PrefetchScalarGridSpec(
            num_scalar_prefetch=0,
            grid=grid,
            in_specs=in_specs,
            out_specs=pl.BlockSpec((TM, TN), lambda i, j, k: (i, j)),
            scratch_shapes=scratch_shapes,
        ),
        compiler_params=pltpu.CompilerParams(
            dimension_semantics=("parallel", "parallel", "arbitrary"),
            vmem_limit_bytes=vmem_limit,
        ),
        cost_estimate=cost,
    )(*operands)

    out = out_padded
    if Bp != B or OUTp != OUT:
        out = out_padded[:B, :OUT]
    return out.reshape(lead_shape + (OUT,))


if __name__ == "__main__":
    key = jax.random.PRNGKey(0)
    kx, kw, kb, kx2, kw2, kb2 = jax.random.split(key, 6)

    # -- Test 1: small Linear (weight-resident single-block path) ------------
    B, IN, OUT = 8, 32, 128
    x = jax.random.normal(kx, (B, IN), dtype=jnp.float32)
    bound = 1.0 / (IN ** 0.5)
    weight = jax.random.uniform(kw, (OUT, IN), jnp.float32, -bound, bound)
    bias = jax.random.uniform(kb, (OUT,), jnp.float32, -bound, bound)

    ref = jnp.matmul(x, weight.T, precision=lax.Precision.HIGHEST) + bias

    out = jax.block_until_ready(nonlinear_forward(x, weight, bias, None))
    assert jnp.allclose(out, ref, atol=1e-5, rtol=1e-5), "linear mismatch"

    out_relu = jax.block_until_ready(
        nonlinear_forward(x, weight, bias, activation="relu"))
    assert jnp.allclose(out_relu, jnp.maximum(ref, 0.0), atol=1e-5, rtol=1e-5)

    out_tanh = jax.block_until_ready(
        nonlinear_forward(x, weight, bias, activation="tanh"))
    assert jnp.allclose(out_tanh, jnp.tanh(ref), atol=1e-5, rtol=1e-5)

    out_nb = jax.block_until_ready(nonlinear_forward(x, weight, None, None))
    ref_nb = jnp.matmul(x, weight.T, precision=lax.Precision.HIGHEST)
    assert jnp.allclose(out_nb, ref_nb, atol=1e-5, rtol=1e-5)

    # -- Test 2: bf16-operand fast path (f32 accumulation, f32 output) -------
    out_bf16 = jax.block_until_ready(
        nonlinear_forward(x, weight, bias, None, operand_dtype=jnp.bfloat16))
    assert jnp.allclose(out_bf16, ref, atol=5e-2, rtol=5e-2), "bf16 path mismatch"

    # -- Test 3: multi-tile grid (M and K tiled, accumulation across k) ------
    B2, IN2, OUT2 = 16, 256, 128
    x3 = jax.random.normal(kx2, (2, B2 // 2, IN2), dtype=jnp.float32)
    bound2 = 1.0 / (IN2 ** 0.5)
    w3 = jax.random.uniform(kw2, (OUT2, IN2), jnp.float32, -bound2, bound2)
    b3 = jax.random.uniform(kb2, (OUT2,), jnp.float32, -bound2, bound2)
    ref3 = jnp.maximum(
        jnp.matmul(x3, w3.T, precision=lax.Precision.HIGHEST) + b3, 0.0)
    out3 = jax.block_until_ready(
        nonlinear_forward(x3, w3, b3, "relu",
                          allow_weight_resident=False, tm=8, tn=128, tk=128))
    assert out3.shape == ref3.shape
    assert jnp.allclose(out3, ref3, atol=1e-4, rtol=1e-4), "tiled path mismatch"

    print("KERNEL_OK")
</pallas_src>

<mosaic_0001>
module attributes {stable_mosaic.version = 11 : i64} {
  func.func @_nonlinear_kernel(%arg0: i32, %arg1: i32, %arg2: i32, %arg3: memref<8x32xf32, #tpu.memory_space<vmem>>, %arg4: memref<128x32xf32, #tpu.memory_space<vmem>>, %arg5: memref<1x128xf32, #tpu.memory_space<vmem>>, %arg6: memref<8x128xf32, #tpu.memory_space<vmem>>) attributes {dimension_semantics = [#tpu.dimension_semantics<parallel>, #tpu.dimension_semantics<parallel>, #tpu.dimension_semantics<arbitrary>], iteration_bounds = array<i64: 1, 1, 1>, scalar_prefetch = 0 : i64, scratch_operands = 0 : i64, tpu.core_type = #tpu.core_type<tc>, window_params = [{transform_indices = @transform_0, window_bounds = array<i64: 8, 32>}, {transform_indices = @transform_1, window_bounds = array<i64: 128, 32>}, {transform_indices = @transform_2, window_bounds = array<i64: 1, 128>}, {transform_indices = @transform_3, window_bounds = array<i64: 8, 128>}]} {
    %c0 = arith.constant 0 : index
    %c0_0 = arith.constant 0 : index
    %0 = vector.load %arg3[%c0, %c0_0] : memref<8x32xf32, #tpu.memory_space<vmem>>, vector<8x32xf32>
    %c0_1 = arith.constant 0 : index
    %c0_2 = arith.constant 0 : index
    %1 = vector.load %arg4[%c0_1, %c0_2] : memref<128x32xf32, #tpu.memory_space<vmem>>, vector<128x32xf32>
    %cst = arith.constant dense<0.000000e+00> : vector<8x128xf32>
    %2 = tpu.matmul %0, %1, %cst {dimension_numbers = #tpu.dot_dimension_numbers<[1], [1], [0], [0], [0, 0, 1, 0], [], []>, precision = #tpu.contract_precision<fp32>} : vector<8x32xf32>, vector<128x32xf32>, vector<8x128xf32> -> vector<8x128xf32>
    %c0_i32 = arith.constant 0 : i32
    %3 = arith.cmpi eq, %arg2, %c0_i32 : i32
    %4 = arith.extui %3 : i1 to i32
    %c0_i32_3 = arith.constant 0 : i32
    %5 = arith.cmpi ne, %4, %c0_i32_3 : i32
    scf.if %5 {
      %c0_8 = arith.constant 0 : index
      %c0_9 = arith.constant 0 : index
      %12 = vector.load %arg6[%c0_8, %c0_9] : memref<8x128xf32, #tpu.memory_space<vmem>>, vector<8x128xf32>
      tpu.vector_store %arg6[%c0_8, %c0_9], %2 {strides = array<i32>} : memref<8x128xf32, #tpu.memory_space<vmem>>, vector<8x128xf32>,
    } else {
    }
    %c0_i32_4 = arith.constant 0 : i32
    %6 = arith.cmpi sgt, %arg2, %c0_i32_4 : i32
    %7 = arith.extui %6 : i1 to i32
    %c0_i32_5 = arith.constant 0 : i32
    %8 = arith.cmpi ne, %7, %c0_i32_5 : i32
    scf.if %8 {
      %c0_8 = arith.constant 0 : index
      %c0_9 = arith.constant 0 : index
      %12 = vector.load %arg6[%c0_8, %c0_9] : memref<8x128xf32, #tpu.memory_space<vmem>>, vector<8x128xf32>
      %13 = arith.addf %12, %2 : vector<8x128xf32>
      %c0_10 = arith.constant 0 : index
      %c0_11 = arith.constant 0 : index
      %14 = vector.load %arg6[%c0_10, %c0_11] : memref<8x128xf32, #tpu.memory_space<vmem>>, vector<8x128xf32>
      tpu.vector_store %arg6[%c0_10, %c0_11], %13 {strides = array<i32>} : memref<8x128xf32, #tpu.memory_space<vmem>>, vector<8x128xf32>,
    } else {
    }
    %c0_i32_6 = arith.constant 0 : i32
    %9 = arith.cmpi eq, %arg2, %c0_i32_6 : i32
    %10 = arith.extui %9 : i1 to i32
    %c0_i32_7 = arith.constant 0 : i32
    %11 = arith.cmpi ne, %10, %c0_i32_7 : i32
    scf.if %11 {
      %c0_8 = arith.constant 0 : index
      %c0_9 = arith.constant 0 : index
      %12 = vector.load %arg6[%c0_8, %c0_9] : memref<8x128xf32, #tpu.memory_space<vmem>>, vector<8x128xf32>
      %c0_10 = arith.constant 0 : index
      %c0_11 = arith.constant 0 : index
      %13 = vector.load %arg5[%c0_10, %c0_11] : memref<1x128xf32, #tpu.memory_space<vmem>>, vector<1x128xf32>
      %14 = vector.broadcast %13 : vector<1x128xf32> to vector<8x128xf32>
      %15 = arith.addf %12, %14 : vector<8x128xf32>
      %c0_12 = arith.constant 0 : index
      %c0_13 = arith.constant 0 : index
      %16 = vector.load %arg6[%c0_12, %c0_13] : memref<8x128xf32, #tpu.memory_space<vmem>>, vector<8x128xf32>
      tpu.vector_store %arg6[%c0_12, %c0_13], %15 {strides = array<i32>} : memref<8x128xf32, #tpu.memory_space<vmem>>, vector<8x128xf32>,
    } else {
    }
    return
  }
  func.func @transform_0(%arg0: i32, %arg1: i32, %arg2: i32) -> (i32, i32) {
    %c0_i32 = arith.constant 0 : i32
    return %arg0, %arg2 : i32, i32
  }
  func.func @transform_1(%arg0: i32, %arg1: i32, %arg2: i32) -> (i32, i32) {
    %c0_i32 = arith.constant 0 : i32
    return %arg1, %arg2 : i32, i32
  }
  func.func @transform_2(%arg0: i32, %arg1: i32, %arg2: i32) -> (i32, i32) {
    %c0_i32 = arith.constant 0 : i32
    %c0_i32_0 = arith.constant 0 : i32
    return %c0_i32, %arg1 : i32, i32
  }
  func.func @transform_3(%arg0: i32, %arg1: i32, %arg2: i32) -> (i32, i32) {
    %c0_i32 = arith.constant 0 : i32
    return %arg0, %arg1 : i32, i32
  }
}

</mosaic_0001>

<bundles_post_ra>
// kernel: tpu_custom_call.1
= control target key start
LH: loop header
LB: loop body
LE: loop exit
PB: predicated region body
PF: predicated region fallthrough
CT: control target
= control target key end

     0   :  { %vm32_vm0 = vcmask 261120   ;;  %v1249_v3 = vmov 0.0|0.0   ;;  %s1591_s0 = inlined_call_operand.vmem [shape: f32[8,32], index: 0, kind: input, shape index: {}]   ;;  %s1592_s1 = inlined_call_operand.vmem [shape: f32[128,32], index: 1, kind: input, shape index: {}]   ;;  %s1593_s2 = inlined_call_operand.vmem [shape: f32[1,128], index: 2, kind: input, shape index: {}]   ;;  %s1594_s3 = inlined_call_operand.hbm [shape: f32[8,128], index: 3, kind: output, shape index: {}]  }
   0x1   :  { %v16_v0 = vld [vmem:[%s1592_s1] sm:$0xff]  ;;  %v17_v1 = vld [vmem:[%s1592_s1 + $0x8] sm:$0xff]  ;;  %v18_v2 = vld [vmem:[%s1592_s1 + $0x10] sm:$0xff]  ;;  %1077 = vmatprep.subr.bf16.mxu0 %v1249_v3  ;;  %1101 = vmatprep.subr.bf16.mxu1 %v1249_v3 }
   0x2   :  { %v37_v4 = vsel %vm32_vm0, %v16_v0, 0  ;;  %v40_v5 = vsel %vm32_vm0, %v17_v1, 0  ;;  %v19_v6 = vld [vmem:[%s1592_s1 + $0x18] sm:$0xff]  ;;  %v43_v7 = vsel %vm32_vm0, %v18_v2, 0  ;;  %v20_v8 = vld [vmem:[%s1592_s1 + $0x20] sm:$0xff]  ;;  %v21_v9 = vld [vmem:[%s1592_s1 + $0x28] sm:$0xff] }
   0x3   :  { %v85_v10 = vand.u32 4294901760, %v37_v4  ;;  %v88_v11 = vand.u32 4294901760, %v40_v5  ;;  %v46_v12 = vsel %vm32_vm0, %v19_v6, 0  ;;  %v91_v13 = vand.u32 4294901760, %v43_v7  ;;  %v22_v24 = vld [vmem:[%s1592_s1 + $0x30] sm:$0xff]  ;;  %v23_v28 = vld [vmem:[%s1592_s1 + $0x38] sm:$0xff] }
   0x4   :  { %v94_v14 = vand.u32 4294901760, %v46_v12  ;;  %v49_v15 = vsel %vm32_vm0, %v20_v8, 0  ;;  %v52_v16 = vsel %vm32_vm0, %v21_v9, 0 }
   0x5   :  { %v1299_v17 = vpack.c.bf16 %v88_v11, %v85_v10  ;;  %v1301_v18 = vsub.f32 %v37_v4, %v85_v10  ;;  %v1303_v19 = vsub.f32 %v40_v5, %v88_v11  ;;  %v1305_v20 = vsub.f32 %v43_v7, %v91_v13 }
   0x6   :  { %v1307_v21 = vsub.f32 %v46_v12, %v94_v14  ;;  %v97_v22 = vand.u32 4294901760, %v49_v15  ;;  %v100_v23 = vand.u32 4294901760, %v52_v16 }
   0x7   :  { %1079 = vmatpush3.bf16.xpose.msra.mxu0 %v1299_v17  ;;  %v178_v25 = vand.u32 4294901760, %v1301_v18  ;;  %v185_v26 = vand.u32 4294901760, %v1303_v19  ;;  %v192_v27 = vand.u32 4294901760, %v1305_v20 }
   0x8   :  { %1080 = vmatprep.subr.bf16.mxu0 %v1249_v3  ;;  %v199_v29 = vand.u32 4294901760, %v1307_v21 }
   0x9   :  { %8 = vsyncpa [#allocation3], 0  ;;  %v179_v30 = vsub.f32 %v1301_v18, %v178_v25  ;;  %v186_v31 = vsub.f32 %v1303_v19, %v185_v26  ;;  %v55_v32 = vsel %vm32_vm0, %v22_v24, 0  ;;  %v1328_v33 = vpack.c.bf16 %v94_v14, %v91_v13  ;;  %v24_v48 = vld [vmem:[%s1592_s1 + $0x40] sm:$0xff]  ;;  %v25_v49 = vld [vmem:[%s1592_s1 + $0x48] sm:$0xff]  ;;  %s1252_s19 = smov [#allocation2]  }
   0xa   :  { %v1330_v34 = vsub.f32 %v49_v15, %v97_v22  ;;  %v1332_v35 = vsub.f32 %v52_v16, %v100_v23  ;;  %v58_v36 = vsel %vm32_vm0, %v23_v28, 0  ;;  %v193_v39 = vsub.f32 %v1305_v20, %v192_v27  ;;  %v26_v0 = vld [vmem:[%s1592_s1 + $0x50] sm:$0xff]  ;;  %v27_v1 = vld [vmem:[%s1592_s1 + $0x58] sm:$0xff]  ;;  %v28_v14 = vld [vmem:[%s1592_s1 + $0x60] sm:$0xff]  ;;  %s756_s20 = sshll.u32 %s1252_s19, 4  ;;  %s757_s20 = int_to_ptr.vmem [resolvable:$true] %s756_s20 }
   0xb   :  { %v180_v37 = vand.u32 4294901760, %v179_v30  ;;  %v187_v38 = vand.u32 4294901760, %v186_v31  ;;  %v200_v40 = vsub.f32 %v1307_v21, %v199_v29  ;;  %v103_v42 = vand.u32 4294901760, %v55_v32  ;;  %v29_v28 = vld [vmem:[%s1592_s1 + $0x68] sm:$0xff]  ;;  %s1225_s21 = scalar_lea.vmem %s757_s20, 128  ;;  %p1230_p1 = scmp.lt.s32.totalorder %s757_s20, %s757_s20 }
   0xc   :  { %v106_v43 = vand.u32 4294901760, %v58_v36  ;;  %v206_v44 = vand.u32 4294901760, %v1330_v34  ;;  %v194_v45 = vand.u32 4294901760, %v193_v39  ;;  %v213_v47 = vand.u32 4294901760, %v1332_v35  ;;  %p1226_p0 = scmp.ne.s32.totalorder %s757_s20, %s1225_s21  ;;  %p1231_p2 = scmp.lt.s32.totalorder %s1225_s21, %s1225_s21 }
   0xd   :  { %v1102_v41 = vpack.c.bf16 %v187_v38, %v180_v37  ;;  %v201_v46 = vand.u32 4294901760, %v200_v40  ;;  %v1352_v50 = vpack.c.bf16 %v100_v23, %v97_v22  ;;  %v1354_v51 = vsub.f32 %v55_v32, %v103_v42 }
   0xe   :  { %v1356_v52 = vsub.f32 %v58_v36, %v106_v43  ;;  %v207_v53 = vsub.f32 %v1330_v34, %v206_v44  ;;  %v214_v55 = vsub.f32 %v1332_v35, %v213_v47  ;;  %v61_v56 = vsel %vm32_vm0, %v24_v48, 0  ;;  %v31_v48 = vld [vmem:[%s1592_s1 + $0x78] sm:$0xff]  ;;  %p1232_p3 = por %p1231_p2, %p1230_p1 }
   0xf   :  { %1082 = vmatpush3.bf16.xpose.msra.mxu0 %v1328_v33  ;;  %1103 = vmatpush3.bf16.xpose.msra.mxu1 %v1102_v41  ;;  %v1105_v54 = vpack.c.bf16 %v201_v46, %v194_v45  ;;  %v64_v57 = vsel %vm32_vm0, %v25_v49, 0  ;;  %v109_v58 = vand.u32 4294901760, %v61_v56  ;;  %v220_v62 = vand.u32 4294901760, %v1354_v51 }
  0x10   :  { %1083 = vmatprep.subr.bf16.mxu0 %v1249_v3  ;;  %1104 = vmatprep.subr.bf16.mxu1 %v1249_v3  ;;  %v112_v59 = vand.u32 4294901760, %v64_v57  ;;  %v208_v60 = vand.u32 4294901760, %v207_v53  ;;  %v215_v61 = vand.u32 4294901760, %v214_v55  ;;  %v227_v63 = vand.u32 4294901760, %v1356_v52  ;;  %p1233_p4 = pnand %p1232_p3, %p1226_p0 }
  0x11   :  { %v1373_v2 = vpack.c.bf16 %v106_v43, %v103_v42  ;;  %v1375_v4 = vsub.f32 %v61_v56, %v109_v58  ;;  %v67_v6 = vsel %vm32_vm0, %v26_v0, 0  ;;  %vm1250_vm1 = vmmov 0  }
  0x12   :  { %v1377_v5 = vsub.f32 %v64_v57, %v112_v59  ;;  %v1251_v7 = vmov 0.0   ;;  %v1108_v8 = vpack.c.bf16 %v215_v61, %v208_v60  ;;  %v221_v9 = vsub.f32 %v1354_v51, %v220_v62  ;;  %v15_v61 = vld [vmem:[%s1591_s0] sm:$0xff] }
  0x13   :  { %899 = vmatprep.mubr.msk.f32.mxu0 %vm1250_vm1, %v1251_v7  ;;  %934 = vmatprep.mubr.msk.f32.mxu1 %vm1250_vm1, %v1251_v7  ;;  %v228_v10 = vsub.f32 %v1356_v52, %v227_v63  ;;  %v70_v11 = vsel %vm32_vm0, %v27_v1, 0  ;;  %v115_v12 = vand.u32 4294901760, %v67_v6  ;;  %v234_v22 = vand.u32 4294901760, %v1375_v4 }
  0x14   :  { %v118_v13 = vand.u32 4294901760, %v70_v11  ;;  %v222_v15 = vand.u32 4294901760, %v221_v9  ;;  %v241_v23 = vand.u32 4294901760, %v1377_v5  ;;  %v1395_v24 = vpack.c.bf16 %v112_v59, %v109_v58 }
  0x15   :  { %v229_v16 = vand.u32 4294901760, %v228_v10  ;;  %v1400_v30 = vsub.f32 %v67_v6, %v115_v12  ;;  %v73_v31 = vsel %vm32_vm0, %v28_v14, 0  ;;  %v1407_v32 = vpack.c.bf16 %v185_v26, %v178_v25 }
  0x16   :  { %v1413_v36 = vpack.c.bf16 %v199_v29, %v192_v27  ;;  %v1415_v37 = vsub.f32 %v70_v11, %v118_v13  ;;  %v1417_v38 = vpack.c.bf16 %v213_v47, %v206_v44  ;;  %v1419_v39 = vpack.c.bf16 %v227_v63, %v220_v62  ;;  %v30_v47 = vld [vmem:[%s1592_s1 + $0x70] sm:$0xff] }
  0x17   :  { %1085 = vmatpush3.bf16.xpose.msra.mxu0 %v1352_v50  ;;  %1106 = vmatpush3.bf16.xpose.msra.mxu1 %v1105_v54  ;;  %v1421_v40 = vpack.c.bf16 %v241_v23, %v234_v22  ;;  %v1111_v41 = vpack.c.bf16 %v229_v16, %v222_v15  ;;  %v235_v42 = vsub.f32 %v1375_v4, %v234_v22  ;;  %v76_v26 = vsel %vm32_vm0, %v29_v28, 0 }
  0x18   :  { %1086 = vmatprep.subr.bf16.mxu0 %v1249_v3  ;;  %1107 = vmatprep.subr.bf16.mxu1 %v1249_v3  ;;  %v242_v25 = vsub.f32 %v1377_v5, %v241_v23  ;;  %v121_v43 = vand.u32 4294901760, %v73_v31  ;;  %v124_v45 = vand.u32 4294901760, %v76_v26  ;;  %v248_v27 = vand.u32 4294901760, %v1400_v30 }
  0x19   :  { %v255_v29 = vand.u32 4294901760, %v1415_v37  ;;  %v236_v44 = vand.u32 4294901760, %v235_v42  ;;  %v1439_v53 = vpack.c.bf16 %v118_v13, %v115_v12  ;;  %v79_v56 = vsel %vm32_vm0, %v30_v47, 0 }
  0x1a   :  { %v243_v46 = vand.u32 4294901760, %v242_v25  ;;  %v1441_v54 = vsub.f32 %v73_v31, %v121_v43  ;;  %v1443_v55 = vsub.f32 %v76_v26, %v124_v45  ;;  %v249_v58 = vsub.f32 %v1400_v30, %v248_v27 }
  0x1b   :  { %v1437_v49 = vpack.c.bf16 %v255_v29, %v248_v27  ;;  %v256_v59 = vsub.f32 %v1415_v37, %v255_v29  ;;  %v82_v60 = vsel %vm32_vm0, %v31_v48, 0  ;;  %v127_v62 = vand.u32 4294901760, %v79_v56 }
  0x1c   :  { %v1114_v57 = vpack.c.bf16 %v243_v46, %v236_v44  ;;  %v130_v63 = vand.u32 4294901760, %v82_v60  ;;  %v262_v0 = vand.u32 4294901760, %v1441_v54  ;;  %v269_v1 = vand.u32 4294901760, %v1443_v55 }
  0x1d   :  { %v250_v6 = vand.u32 4294901760, %v249_v58  ;;  %v34_v9 = vsel %vm32_vm0, %v15_v61, 0  ;;  %v1460_v11 = vsub.f32 %v79_v56, %v127_v62  ;;  %v1466_v14 = vpack.c.bf16 %v124_v45, %v121_v43 }
  0x1e   :  { %v1458_v10 = vpack.c.bf16 %v269_v1, %v262_v0  ;;  %v1462_v12 = vsub.f32 %v82_v60, %v130_v63  ;;  %v1464_v13 = vand.u32 4294901760, %v34_v9  ;;  %v263_v16 = vsub.f32 %v1441_v54, %v262_v0 }
  0x1f   :  { %1088 = vmatpush3.bf16.xpose.msra.mxu0 %v1373_v2  ;;  %1109 = vmatpush3.bf16.xpose.msra.mxu1 %v1108_v8  ;;  %v257_v8 = vand.u32 4294901760, %v256_v59  ;;  %v270_v22 = vsub.f32 %v1443_v55, %v269_v1  ;;  %v276_v28 = vand.u32 4294901760, %v1460_v11  ;;  %v1481_v43 = vpack.c.bf16 %v130_v63, %v127_v62 }
  0x20   :  { %1089 = vmatprep.subr.bf16.mxu0 %v1249_v3  ;;  %1110 = vmatprep.subr.bf16.mxu1 %v1249_v3  ;;  %v1471_v23 = vsub.f32 %v34_v9, %v1464_v13  ;;  %v283_v31 = vand.u32 4294901760, %v1462_v12  ;;  %v1129_v58 = vpack.c.bf16 %v1307_v21, %v1305_v20  ;;  %v1138_v20 = vpack.c.bf16 %v1377_v5, %v1375_v4 }
  0x21   :  { %v1117_v15 = vpack.c.bf16 %v257_v8, %v250_v6  ;;  %v271_v42 = vand.u32 4294901760, %v270_v22  ;;  %v277_v27 = vsub.f32 %v1460_v11, %v276_v28  ;;  %v1141_v21 = vpack.c.bf16 %v1415_v37, %v1400_v30 }
  0x22   :  { %v1478_v25 = vpack.c.bf16 %v283_v31, %v276_v28  ;;  %v167_v26 = vand.u32 4294901760, %v1471_v23  ;;  %v284_v29 = vsub.f32 %v1462_v12, %v283_v31 }
  0x23   :  { %v278_v46 = vand.u32 4294901760, %v277_v27 }
  0x24   :  { %v168_v44 = vsub.f32 %v1471_v23, %v167_v26  ;;  %v285_v47 = vand.u32 4294901760, %v284_v29 }
  0x26   :  { %v169_v48 = vand.u32 4294901760, %v168_v44  ;;  %v1123_v56 = vpack.c.bf16 %v285_v47, %v278_v46 }
  0x27   :  { %1091 = vmatpush3.bf16.xpose.msra.mxu0 %v1395_v24  ;;  %1112 = vmatpush3.bf16.xpose.msra.mxu1 %v1111_v41  ;;  %v264_v41 = vand.u32 4294901760, %v263_v16 }
  0x28   :  { %1092 = vmatprep.subr.bf16.mxu0 %v1249_v3  ;;  %1113 = vmatprep.subr.bf16.mxu1 %v1249_v3 }
  0x29   :  { %v1120_v45 = vpack.c.bf16 %v271_v42, %v264_v41 }
  0x2f   :  { %1094 = vmatpush3.bf16.xpose.msra.mxu0 %v1439_v53  ;;  %1115 = vmatpush3.bf16.xpose.msra.mxu1 %v1114_v57  ;;  %v1126_v57 = vpack.c.bf16 %v1303_v19, %v1301_v18  ;;  %v1132_v18 = vpack.c.bf16 %v1332_v35, %v1330_v34  ;;  %v1135_v19 = vpack.c.bf16 %v1356_v52, %v1354_v51 }
  0x30   :  { %1095 = vmatprep.subr.bf16.mxu0 %v1249_v3  ;;  %1116 = vmatprep.subr.bf16.mxu1 %v1249_v3  ;;  %v1144_v34 = vpack.c.bf16 %v1443_v55, %v1441_v54  ;;  %v1147_v35 = vpack.c.bf16 %v1462_v12, %v1460_v11 }
  0x37   :  { %1097 = vmatpush3.bf16.xpose.msra.mxu0 %v1466_v14  ;;  %1118 = vmatpush3.bf16.xpose.msra.mxu1 %v1117_v15 }
  0x38   :  { %1098 = vmatprep.subr.bf16.mxu0 %v1249_v3  ;;  %1119 = vmatprep.subr.bf16.mxu1 %v1249_v3 }
  0x3f   :  { %1100 = vmatpush3.bf16.xpose.msra.mxu0 %v1481_v43  ;;  %1121 = vmatpush3.bf16.xpose.msra.mxu1 %v1120_v45 }
  0x40   :  { %1122 = vmatprep.subr.bf16.mxu1 %v1249_v3  ;;  %1125 = vmatprep.subr.bf16.mxu0 %v1249_v3 }
  0x46   :  { %900 = vmatmul.mubr.f32.vlgmr.msra.gmra.mrb[0].mxu0 %v169_v48 }
  0x47   :  { %1124 = vmatpush3.bf16.xpose.msra.mxu1 %v1123_v56  ;;  %1127 = vmatpush3.bf16.xpose.msra.mxu0 %v1126_v57 }
  0x48   :  { %1128 = vmatprep.subr.bf16.mxu0 %v1249_v3  ;;  %1149 = vmatprep.subr.bf16.mxu1 %v1249_v3 }
  0x49   :  { %969 = vmatprep.mubr.msk.f32.mxu0 %vm1250_vm1, %v1251_v7 }
  0x4e   :  { %935 = vmatmul.mubr.f32.vlgmr.msra.gmra.mrb[0].mxu1 %v1464_v13 }
  0x4f   :  { %1130 = vmatpush3.bf16.xpose.msra.mxu0 %v1129_v58  ;;  %1151 = vmatpush3.bf16.xpose.msra.mxu1 %v1299_v17 }
  0x50   :  { %1131 = vmatprep.subr.bf16.mxu0 %v1249_v3  ;;  %1152 = vmatprep.subr.bf16.mxu1 %v1249_v3 }
  0x51   :  { %1004 = vmatprep.mubr.msk.f32.mxu1 %vm1250_vm1, %v1251_v7 }
  0x57   :  { %1133 = vmatpush3.bf16.xpose.msra.mxu0 %v1132_v18  ;;  %1154 = vmatpush3.bf16.xpose.msra.mxu1 %v1328_v33 }
  0x58   :  { %1134 = vmatprep.subr.bf16.mxu0 %v1249_v3  ;;  %1155 = vmatprep.subr.bf16.mxu1 %v1249_v3 }
  0x5f   :  { %1136 = vmatpush3.bf16.xpose.msra.mxu0 %v1135_v19  ;;  %1157 = vmatpush3.bf16.xpose.msra.mxu1 %v1352_v50 }
  0x60   :  { %1137 = vmatprep.subr.bf16.mxu0 %v1249_v3  ;;  %1158 = vmatprep.subr.bf16.mxu1 %v1249_v3 }
  0x67   :  { %1139 = vmatpush3.bf16.xpose.msra.mxu0 %v1138_v20  ;;  %1160 = vmatpush3.bf16.xpose.msra.mxu1 %v1373_v2 }
  0x68   :  { %1140 = vmatprep.subr.bf16.mxu0 %v1249_v3  ;;  %1161 = vmatprep.subr.bf16.mxu1 %v1249_v3 }
  0x6f   :  { %1142 = vmatpush3.bf16.xpose.msra.mxu0 %v1141_v21  ;;  %1163 = vmatpush3.bf16.xpose.msra.mxu1 %v1395_v24 }
  0x70   :  { %1143 = vmatprep.subr.bf16.mxu0 %v1249_v3  ;;  %1164 = vmatprep.subr.bf16.mxu1 %v1249_v3 }
  0x77   :  { %1145 = vmatpush3.bf16.xpose.msra.mxu0 %v1144_v34  ;;  %1166 = vmatpush3.bf16.xpose.msra.mxu1 %v1439_v53 }
  0x78   :  { %1146 = vmatprep.subr.bf16.mxu0 %v1249_v3  ;;  %1167 = vmatprep.subr.bf16.mxu1 %v1249_v3 }
  0x7f   :  { %1148 = vmatpush3.bf16.xpose.msra.mxu0 %v1147_v35  ;;  %1169 = vmatpush3.bf16.xpose.msra.mxu1 %v1466_v14 }
  0x80   :  { %1170 = vmatprep.subr.bf16.mxu1 %v1249_v3  ;;  %1173 = vmatprep.subr.bf16.mxu0 %v1249_v3 }
  0x86   :  { %970 = vmatmul.mubr.f32.vlgmr.msra.gmra.mrb[2].mxu0 %v1471_v23 }
  0x87   :  { %1172 = vmatpush3.bf16.xpose.msra.mxu1 %v1481_v43  ;;  %1175 = vmatpush3.bf16.xpose.msra.mxu0 %v1407_v32 }
  0x88   :  { %1176 = vmatprep.subr.bf16.mxu0 %v1249_v3  ;;  %1197 = vmatprep.subr.bf16.mxu1 %v1249_v3 }
  0x89   :  { %1039 = vmatprep.mubr.msk.f32.mxu0 %vm1250_vm1, %v1251_v7 }
  0x8e   :  { %1005 = vmatmul.mubr.f32.vlgmr.msra.gmra.mrb[2].mxu1 %v167_v26 }
  0x8f   :  { %1178 = vmatpush3.bf16.xpose.msra.mxu0 %v1413_v36  ;;  %1199 = vmatpush3.bf16.xpose.msra.mxu1 %v1299_v17 }
  0x90   :  { %1179 = vmatprep.subr.bf16.mxu0 %v1249_v3  ;;  %1200 = vmatprep.subr.bf16.mxu1 %v1249_v3 }
  0x91   :  { %1074 = vmatprep.mubr.msk.f32.mxu1 %vm1250_vm1, %v1251_v7 }
  0x97   :  { %1181 = vmatpush3.bf16.xpose.msra.mxu0 %v1417_v38  ;;  %1202 = vmatpush3.bf16.xpose.msra.mxu1 %v1328_v33  ;;  %v764_v38 = vld [vmem:[%s1593_s2] ss:$0 sm:$0xff] }
  0x98   :  { %1182 = vmatprep.subr.bf16.mxu0 %v1249_v3  ;;  %1203 = vmatprep.subr.bf16.mxu1 %v1249_v3 }
  0x9f   :  { %1184 = vmatpush3.bf16.xpose.msra.mxu0 %v1419_v39  ;;  %1205 = vmatpush3.bf16.xpose.msra.mxu1 %v1352_v50 }
  0xa0   :  { %1185 = vmatprep.subr.bf16.mxu0 %v1249_v3  ;;  %1206 = vmatprep.subr.bf16.mxu1 %v1249_v3 }
  0xa7   :  { %1187 = vmatpush3.bf16.xpose.msra.mxu0 %v1421_v40  ;;  %1208 = vmatpush3.bf16.xpose.msra.mxu1 %v1373_v2 }
  0xa8   :  { %1188 = vmatprep.subr.bf16.mxu0 %v1249_v3  ;;  %1209 = vmatprep.subr.bf16.mxu1 %v1249_v3 }
  0xaf   :  { %1190 = vmatpush3.bf16.xpose.msra.mxu0 %v1437_v49  ;;  %1211 = vmatpush3.bf16.xpose.msra.mxu1 %v1395_v24 }
  0xb0   :  { %1191 = vmatprep.subr.bf16.mxu0 %v1249_v3  ;;  %1212 = vmatprep.subr.bf16.mxu1 %v1249_v3 }
  0xb7   :  { %1193 = vmatpush3.bf16.xpose.msra.mxu0 %v1458_v10  ;;  %1214 = vmatpush3.bf16.xpose.msra.mxu1 %v1439_v53 }
  0xb8   :  { %1194 = vmatprep.subr.bf16.mxu0 %v1249_v3  ;;  %1215 = vmatprep.subr.bf16.mxu1 %v1249_v3 }
  0xbf   :  { %1196 = vmatpush3.bf16.xpose.msra.mxu0 %v1478_v25  ;;  %1217 = vmatpush3.bf16.xpose.msra.mxu1 %v1466_v14 }
  0xc0   :  { %1218 = vmatprep.subr.bf16.mxu1 %v1249_v3 }
  0xc6   :  { %1040 = vmatmul.mubr.f32.vlgmr.msra.gmra.mrb[4].mxu0 %v1464_v13 }
  0xc7   :  { %1220 = vmatpush3.bf16.xpose.msra.mxu1 %v1481_v43 }
  0xce   :  { %1075 = vmatmul.mubr.f32.vlgmr.msra.gmra.mrb[4].mxu1 %v1464_v13 }
 0x119   :  { %v171_v17 = vpop.f32.mrb[0].mxu0 }
 0x11a   :  { %v901_v33 = vpop.f32.mrb[1].mxu0 }
 0x121   :  { %v322_v50 = vpop.f32.mrb[0].mxu1 }
 0x122   :  { %v323_v51 = vadd.f32 %v322_v50, %v171_v17  ;;  %v936_v52 = vpop.f32.mrb[1].mxu1 }
 0x159   :  { %v426_v2 = vpop.f32.mrb[2].mxu0 }
 0x15a   :  { %v427_v4 = vadd.f32 %v426_v2, %v323_v51  ;;  %v971_v5 = vpop.f32.mrb[3].mxu0 }
 0x161   :  { %v515_v7 = vpop.f32.mrb[2].mxu1 }
 0x162   :  { %v516_v24 = vadd.f32 %v515_v7, %v427_v4  ;;  %v1006_v30 = vpop.f32.mrb[3].mxu1 }
 0x199   :  { %v634_v32 = vpop.f32.mrb[4].mxu0 }
 0x19a   :  { %v635_v36 = vadd.f32 %v634_v32, %v516_v24  ;;  %v1041_v3 = vpop.f32.mrb[5].mxu0 }
 0x1a1   :  { %v721_v37 = vpop.f32.mrb[4].mxu1 }
 0x1a2   :  { %v722_v39 = vadd.f32 %v721_v37, %v635_v36  ;;  %v1076_v40 = vpop.f32.mrb[5].mxu1 }
 0x1a4   :  { %v748_v49 = vadd.f32 %v764_v38, %v722_v39 }
 0x1a6   :  { %749 = vst [vmem:[#allocation2] sm:$0xff] %v748_v49 }
 0x1a7   :  { %1236 = shalt.err (!%p1233_p4)
}
 0x1a8   :  { %s1237_s24 = scalar_lea.hbm %s1594_s3, 128 }
 0x1a9   :  { %p1238_p5 = scmp.ne.s32.totalorder %s1594_s3, %s1237_s24  ;;  %p1241_p6 = scmp.lt.u32.totalorder %s1237_s24, %s1594_s3 }
 0x1ab   :  { %p1243_p7 = pnand %p1241_p6, %p1238_p5 }
 0x1ad   :  { %1246 = shalt.err (!%p1243_p7)
}
 0x1ae   :  { %759 = dma.vmem_to_hbm [thread:$0]  %s757_s20, 128, %s1594_s3, [#allocation3]  }
 0x1af   :  { %1247 = dma.done.wait [#allocation3], 128  }
 0x1b0   :  { %1248 = vsyncadd [#allocation3], 4294967168 }
 0x1b1   :  { %763 = vsyncpa [#allocation3], 1 }

</bundles_post_ra>
